<compile_context>
chip_gen: v6e
topology: v6e:2x2x1
jax: 0.10.0
libtpu: 0.0.40
codegen_flags: <defaults>
</compile_context>

<pallas_src>
import jax
import jax.numpy as jnp
from jax.experimental import pallas as pl
from jax.experimental.pallas import tpu as pltpu


def _round_up(n, m):
    return ((n + m - 1) // m) * m


def _cdiv(a, b):
    return -(-a // b)


def _vmem_limit_bytes():
    # Generation-aware budget: ~75% of physical VMEM (128 MiB v5e/v6e, 64 MiB v7x).
    try:
        cap = pltpu.get_tpu_info().vmem_capacity_bytes
    except Exception:
        cap = 64 * 1024 * 1024
    return int(min(cap * 3 // 4, 100 * 1024 * 1024))


def _choose_batch_tile(B, tb_max):
    # Minimize batch padding (always < one tile of waste) and, whenever B > 8, give
    # the grid >= 2 steps so the "parallel" axis can be sharded across v7x's 2 TCs.
    tb_max = max(_round_up(tb_max, 8), 8)
    n = max(_cdiv(B, tb_max), 1)
    if n == 1 and B > 8:
        n = 2
    tb = _round_up(_cdiv(B, n), 8)
    n = _cdiv(B, tb)
    return tb, n


def linear_softmax_kernel(x_ref, w_ref, b_ref, o_ref):
    # x_ref: (TB, D_in); w_ref: (D_in, D_out_p) [(K, N) MXU layout]; b_ref: (1, D_out_p)
    logits = jnp.dot(x_ref[...], w_ref[...], preferred_element_type=jnp.float32)
    logits = logits + b_ref[...]                      # bias broadcast over batch (f32)
    # Numerically-stable softmax along dim=1; padded cols carry a ~-inf bias so their
    # exp() underflows to exactly 0 and contributes nothing to the denominator.
    m = jnp.max(logits, axis=1, keepdims=True)
    e = jnp.exp(logits - m)
    denom = jnp.sum(e, axis=1, keepdims=True)
    o_ref[...] = (e / denom).astype(o_ref.dtype)      # exact divide (correctness)


def prepare_linear_softmax_params(weight, bias, *, matmul_dtype=None):
    """One-time parameter setup (hoisted out of the per-call path).

    weight: (D_out, D_in) in PyTorch layout; bias: (D_out,).
    Returns (w_t, b_p, D_out) with w_t in MXU-natural (D_in, D_out_p) layout,
    D_out padded up to a lane-dense multiple of 128, and padded bias lanes set to
    a huge negative value so no probability mass leaks into the padding.
    """
    D_out, D_in = weight.shape
    D_out_p = _round_up(max(D_out, 128), 128)

    w_t = weight.T                                     # (D_in, D_out), done once
    if D_out_p != D_out:
        w_t = jnp.pad(w_t, ((0, 0), (0, D_out_p - D_out)))
        pad_val = float(jnp.finfo(jnp.float32).min) / 2.0   # exp() underflows to 0
        b_p = jnp.concatenate(
            [bias.astype(jnp.float32),
             jnp.full((D_out_p - D_out,), pad_val, dtype=jnp.float32)]
        )
    else:
        b_p = bias.astype(jnp.float32)

    if matmul_dtype is not None:
        w_t = w_t.astype(matmul_dtype)
    return w_t, b_p.reshape(1, D_out_p), D_out


def classification_model_softmax_apply(x, w_t, b_p, d_out, *, tb=512,
                                       matmul_dtype=None):
    """x: (B, D_in); w_t: (D_in, D_out_p); b_p: (1, D_out_p)."""
    B, D_in = x.shape
    D_in_w, D_out_p = w_t.shape
    assert D_in == D_in_w

    TB, n_tiles = _choose_batch_tile(B, tb)
    B_p = TB * n_tiles
    x_p = x if B_p == B else jnp.pad(x, ((0, B_p - B), (0, 0)))
    if matmul_dtype is not None:
        x_p = x_p.astype(matmul_dtype)

    # NOTE: W stays fully resident in VMEM (grid-invariant BlockSpec). For very large
    # heads (D_in * D_out_p * bytes beyond the VMEM budget, half-size on v7x) a
    # K-tiled grid axis with an f32 accumulator + pl.when epilogue would be needed.
    out = pl.pallas_call(
        linear_softmax_kernel,
        out_shape=jax.ShapeDtypeStruct((B_p, D_out_p), jnp.float32),
        grid_spec=pltpu.PrefetchScalarGridSpec(
            num_scalar_prefetch=0,
            grid=(n_tiles,),
            in_specs=[
                pl.BlockSpec((TB, D_in), lambda i: (i, 0)),        # x batch tile
                pl.BlockSpec((D_in, D_out_p), lambda i: (0, 0)),   # full W (K,N), resident
                pl.BlockSpec((1, D_out_p), lambda i: (0, 0)),      # full bias
            ],
            out_specs=pl.BlockSpec((TB, D_out_p), lambda i: (i, 0)),
        ),
        compiler_params=pltpu.CompilerParams(
            dimension_semantics=("parallel",),      # shard batch tiles across TCs
            vmem_limit_bytes=_vmem_limit_bytes(),   # generation-aware budget
        ),
    )(x_p, w_t, b_p)

    if B_p == B and D_out_p == d_out:
        return out
    return out[:B, :d_out]


def classification_model_softmax(x, weight, bias, *, tb=512, matmul_dtype=None):
    """Convenience wrapper: nn.Linear(input_size, output_size) + softmax(dim=1)."""
    w_t, b_p, d_out = prepare_linear_softmax_params(weight, bias,
                                                    matmul_dtype=matmul_dtype)
    return classification_model_softmax_apply(x, w_t, b_p, d_out, tb=tb,
                                              matmul_dtype=matmul_dtype)


if __name__ == "__main__":
    key = jax.random.PRNGKey(0)
    k_x, k_w, k_b = jax.random.split(key, 3)

    batch = 8
    input_size = 32
    output_size = 16

    x = jax.random.normal(k_x, (batch, input_size), dtype=jnp.float32)
    # deterministic "init" mimicking nn.Linear's uniform(-1/sqrt(fan_in), 1/sqrt(fan_in))
    bound = 1.0 / (input_size ** 0.5)
    weight = jax.random.uniform(k_w, (output_size, input_size),
                                minval=-bound, maxval=bound, dtype=jnp.float32)
    bias = jax.random.uniform(k_b, (output_size,),
                              minval=-bound, maxval=bound, dtype=jnp.float32)

    out = classification_model_softmax(x, weight, bias)
    jax.block_until_ready(out)

    # sanity check against pure-JAX reference
    ref = jax.nn.softmax(x @ weight.T + bias, axis=1)
    assert out.shape == (batch, output_size)
    assert jnp.allclose(out, ref, atol=1e-4, rtol=1e-4), "mismatch vs reference"

    print("KERNEL_OK")
</pallas_src>

<mosaic_0001>
module attributes {stable_mosaic.version = 11 : i64} {
  func.func @linear_softmax_kernel(%arg0: i32, %arg1: memref<8x32xf32, #tpu.memory_space<vmem>>, %arg2: memref<32x128xf32, #tpu.memory_space<vmem>>, %arg3: memref<1x128xf32, #tpu.memory_space<vmem>>, %arg4: memref<8x128xf32, #tpu.memory_space<vmem>>) attributes {dimension_semantics = [#tpu.dimension_semantics<parallel>], iteration_bounds = array<i64: 1>, scalar_prefetch = 0 : i64, scratch_operands = 0 : i64, tpu.core_type = #tpu.core_type<tc>, window_params = [{transform_indices = @transform_0, window_bounds = array<i64: 8, 32>}, {pipeline_mode = #tpu.pipeline_mode<synchronous>, transform_indices = @transform_1, window_bounds = array<i64: 32, 128>}, {pipeline_mode = #tpu.pipeline_mode<synchronous>, transform_indices = @transform_2, window_bounds = array<i64: 1, 128>}, {transform_indices = @transform_3, window_bounds = array<i64: 8, 128>}]} {
    %c0 = arith.constant 0 : index
    %c0_0 = arith.constant 0 : index
    %0 = vector.load %arg1[%c0, %c0_0] : memref<8x32xf32, #tpu.memory_space<vmem>>, vector<8x32xf32>
    %c0_1 = arith.constant 0 : index
    %c0_2 = arith.constant 0 : index
    %1 = vector.load %arg2[%c0_1, %c0_2] : memref<32x128xf32, #tpu.memory_space<vmem>>, vector<32x128xf32>
    %cst = arith.constant dense<0.000000e+00> : vector<8x128xf32>
    %2 = tpu.matmul %0, %1, %cst {dimension_numbers = #tpu.dot_dimension_numbers<[1], [0], [0], [1], [0, 0, 1, 1], [], []>} : vector<8x32xf32>, vector<32x128xf32>, vector<8x128xf32> -> vector<8x128xf32>
    %c0_3 = arith.constant 0 : index
    %c0_4 = arith.constant 0 : index
    %3 = vector.load %arg3[%c0_3, %c0_4] : memref<1x128xf32, #tpu.memory_space<vmem>>, vector<1x128xf32>
    %4 = vector.broadcast %3 : vector<1x128xf32> to vector<8x128xf32>
    %5 = arith.addf %2, %4 : vector<8x128xf32>
    %cst_5 = arith.constant dense<0xFF800000> : vector<8xf32>
    %6 = vector.multi_reduction <maximumf>, %5, %cst_5 [1] : vector<8x128xf32> to vector<8xf32>
    %7 = vector.shape_cast %6 : vector<8xf32> to vector<8x1xf32>
    %8 = vector.broadcast %7 : vector<8x1xf32> to vector<8x128xf32>
    %9 = arith.subf %5, %8 : vector<8x128xf32>
    %10 = math.exp %9 : vector<8x128xf32>
    %cst_6 = arith.constant dense<0.000000e+00> : vector<8xf32>
    %11 = vector.multi_reduction <add>, %10, %cst_6 [1] : vector<8x128xf32> to vector<8xf32>
    %12 = vector.shape_cast %11 : vector<8xf32> to vector<8x1xf32>
    %13 = vector.broadcast %12 : vector<8x1xf32> to vector<8x128xf32>
    %14 = arith.divf %10, %13 : vector<8x128xf32>
    %c0_7 = arith.constant 0 : index
    %c0_8 = arith.constant 0 : index
    %15 = vector.load %arg4[%c0_7, %c0_8] : memref<8x128xf32, #tpu.memory_space<vmem>>, vector<8x128xf32>
    tpu.vector_store %arg4[%c0_7, %c0_8], %14 {strides = array<i32>} : memref<8x128xf32, #tpu.memory_space<vmem>>, vector<8x128xf32>,
    return
  }
  func.func @transform_0(%arg0: i32) -> (i32, i32) {
    %c0_i32 = arith.constant 0 : i32
    %c0_i32_0 = arith.constant 0 : i32
    return %arg0, %c0_i32 : i32, i32
  }
  func.func @transform_1(%arg0: i32) -> (i32, i32) {
    %c0_i32 = arith.constant 0 : i32
    %c0_i32_0 = arith.constant 0 : i32
    %c0_i32_1 = arith.constant 0 : i32
    return %c0_i32, %c0_i32_0 : i32, i32
  }
  func.func @transform_2(%arg0: i32) -> (i32, i32) {
    %c0_i32 = arith.constant 0 : i32
    %c0_i32_0 = arith.constant 0 : i32
    %c0_i32_1 = arith.constant 0 : i32
    return %c0_i32, %c0_i32_0 : i32, i32
  }
  func.func @transform_3(%arg0: i32) -> (i32, i32) {
    %c0_i32 = arith.constant 0 : i32
    %c0_i32_0 = arith.constant 0 : i32
    return %arg0, %c0_i32 : i32, i32
  }
}

</mosaic_0001>

<bundles_post_ra>
// kernel: tpu_custom_call.1
= control target key start
LH: loop header
LB: loop body
LE: loop exit
PB: predicated region body
PF: predicated region fallthrough
CT: control target
= control target key end

     0   :  { %8 = vsyncpa [#allocation3], 0  ;;  %s287_s0 = inlined_call_operand.hbm [shape: f32[8,32], index: 0, kind: input, shape index: {}]   ;;  %s288_s1 = inlined_call_operand.hbm [shape: f32[32,128], index: 1, kind: input, shape index: {}]   ;;  %s289_s2 = inlined_call_operand.vmem [shape: f32[1,128], index: 2, kind: input, shape index: {}]   ;;  %s290_s3 = inlined_call_operand.hbm [shape: f32[8,128], index: 3, kind: output, shape index: {}]  }
   0x1   :  { %9 = vsyncpa [#allocation6], 0 }
   0x2   :  { %10 = vsyncpa [#allocation4], 0  ;;  %s248_s12 = smov [#allocation2]   ;;  %s249_s14 = smov [#allocation5]  }
   0x3   :  { %s17_s13 = sshll.u32 %s248_s12, 4  ;;  %s26_s15 = sshll.u32 %s249_s14, 4  ;;  %s18_s13 = int_to_ptr.vmem [resolvable:$true] %s17_s13  ;;  %s27_s15 = int_to_ptr.vmem [resolvable:$true] %s26_s15 }
   0x4   :  { %s190_s16 = scalar_lea.vmem %s18_s13, 128  ;;  %p195_p1 = scmp.lt.s32.totalorder %s18_s13, %s18_s13 }
   0x5   :  { %p191_p0 = scmp.ne.s32.totalorder %s18_s13, %s190_s16  ;;  %p196_p2 = scmp.lt.s32.totalorder %s190_s16, %s190_s16 }
   0x7   :  { %p197_p3 = por %p196_p2, %p195_p1 }
   0x9   :  { %p198_p4 = pnand %p197_p3, %p191_p0 }
   0xb   :  { %201 = shalt.err (!%p198_p4)
}
   0xc   :  { %20 = dma.hbm_to_vmem [thread:$0]  %s287_s0, 128, %s18_s13, [#allocation3]  }
   0xd   :  { %s210_s19 = scalar_lea.vmem %s27_s15, 512  ;;  %p215_p6 = scmp.lt.s32.totalorder %s27_s15, %s27_s15 }
   0xe   :  { %p211_p5 = scmp.ne.s32.totalorder %s27_s15, %s210_s19  ;;  %p216_p7 = scmp.lt.s32.totalorder %s210_s19, %s210_s19 }
  0x10   :  { %p217_p8 = por %p216_p7, %p215_p6 }
  0x12   :  { %p218_p9 = pnand %p217_p8, %p211_p5 }
  0x14   :  { %221 = shalt.err (!%p218_p9)
}
  0x15   :  { %s250_s20 = smov 128   ;;  %s251_s21 = smov 8  }
  0x16   :  { %32 = dma.hbm_to_vmem [thread:$0]  %s288_s1, 512, %s27_s15, [#allocation6], %s250_s20, %s250_s20, %s251_s21  }
  0x17   :  { %242 = dma.done.wait [#allocation3], 128  }
  0x18   :  { %243 = vsyncadd [#allocation3], 4294967168 }
  0x19   :  { %244 = dma.done.wait [#allocation6], 512  }
  0x1a   :  { %245 = vsyncadd [#allocation6], 4294966784  ;;  %v252_v0 = vmov 0.0   ;;  %vm253_vm0 = vmmov 0   ;;  %v45_v1 = vld [vmem:[#allocation5 + $0x18] sm:$0xff]  ;;  %v44_v2 = vld [vmem:[#allocation5 + $0x10] sm:$0xff] }
  0x1b   :  { %160 = vmatprep.subr.mxu0 %v252_v0  ;;  %168 = vmatprep.mubr.msk.f32.mxu0 %vm253_vm0, %v252_v0  ;;  %v43_v3 = vld [vmem:[#allocation5 + $0x8] sm:$0xff]  ;;  %v42_v4 = vld [vmem:[#allocation5] sm:$0xff]  ;;  %v41_v5 = vld [vmem:[#allocation2] sm:$0xff]  ;;  %vm53_vm1 = vcmask 261120   ;;  %s254_s24 = smov [#allocation7]  }
  0x1c   :  { %161 = vmatpush3.msra.mxu0 %v45_v1  ;;  %v153_v6 = vld [vmem:[%s289_s2] ss:$0 sm:$0xff]  ;;  %s143_s25 = sshll.u32 %s254_s24, 4  ;;  %s144_s25 = int_to_ptr.vmem [resolvable:$true] %s143_s25 }
  0x1d   :  { %162 = vmatprep.subr.mxu0 %v252_v0  ;;  %s222_s26 = scalar_lea.vmem %s144_s25, 128  ;;  %p227_p11 = scmp.lt.s32.totalorder %s144_s25, %s144_s25 }
  0x1e   :  { %163 = vmatpush3.msra.mxu0 %v44_v2  ;;  %p223_p10 = scmp.ne.s32.totalorder %s144_s25, %s222_s26  ;;  %p228_p12 = scmp.lt.s32.totalorder %s222_s26, %s222_s26 }
  0x1f   :  { %164 = vmatprep.subr.mxu0 %v252_v0 }
  0x20   :  { %165 = vmatpush3.msra.mxu0 %v43_v3  ;;  %p229_p13 = por %p228_p12, %p227_p11 }
  0x21   :  { %166 = vmatprep.subr.mxu0 %v252_v0 }
  0x22   :  { %167 = vmatpush3.msra.mxu0 %v42_v4  ;;  %p230_p0 = pnand %p229_p13, %p223_p10 }
  0x23   :  { %169 = vmatmul.mubr.msk.f32.vlgmr.msra.gmra.mxu0 %vm53_vm1, %v41_v5 }
  0xe3   :  { %v123_v7 = vpop.f32.mrf.mxu0 }
  0xe4   :  { %v124_v8 = vadd.f32 %v153_v6, %v123_v7 }
  0xe5   :  { %v170_v9 = vpop.f32.mrf.mxu0 }
  0xe6   :  { %127 = vmax.xlane.f32.xlu0 %v124_v8 }
 0x16f   :  { %v128_v10 = vpop.xlane.xlu0 %127 }
 0x170   :  { %v129_v11 = vsub.f32 %v124_v8, %v128_v10 }
 0x172   :  { %v130_v12 = vmul.f32 1.442695, %v129_v11 }
 0x174   :  { %178 = vpow2.f32 %v130_v12 }
 0x181   :  { %v179_v13 = vpop.eup %178 }
 0x182   :  { %132 = vadd.xlane.f32.xlu0 %v179_v13 }
 0x20b   :  { %v133_v14 = vpop.xlane.xlu0 %132 }
 0x20c   :  { %180 = vrcp.f32 %v133_v14 }
 0x219   :  { %v181_v15 = vpop.eup %180 }
 0x21a   :  { %v135_v16 = vmul.f32 %v181_v15, %v179_v13 }
 0x21c   :  { %136 = vst [vmem:[#allocation7] sm:$0xff] %v135_v16 }
 0x21d   :  { %233 = shalt.err (!%p230_p0)
}
 0x21e   :  { %146 = dma.vmem_to_hbm [thread:$0]  %s144_s25, 128, %s290_s3, [#allocation4]  }
 0x21f   :  { %246 = dma.done.wait [#allocation4], 128  }
 0x220   :  { %247 = vsyncadd [#allocation4], 4294967168 }
 0x221   :  { %150 = vsyncpa [#allocation3], 1 }
 0x222   :  { %151 = vsyncpa [#allocation6], 1 }
 0x223   :  { %152 = vsyncpa [#allocation4], 1 }

</bundles_post_ra>
